<compile_context>
chip_gen: v7x
topology: tpu7x:2x2x1
jax: 0.10.0
libtpu: 0.0.40
codegen_flags: <defaults>
</compile_context>

<pallas_src>
import jax
import jax.numpy as jnp
from jax import lax
from jax.experimental import pallas as pl
from jax.experimental.pallas import tpu as pltpu


def _bce_logits_partial_kernel(pred_ref, targ_ref, out_ref, acc_ref):
    """Grid = (shards, inner_tiles).

    Per inner step: numerically-stable elementwise BCE-with-logits on a
    lane-dense (tile_rows, lanes) block, accumulated into a full-tile f32
    VMEM accumulator (pure VPU adds, no per-step cross-lane reduce, no
    masked partial stores).  The single cross-lane reduction to a scalar
    happens once per shard on the last inner iteration; the scalar lands in
    slot [0, 0] of that shard's lane-dense (8, 128) output block (all other
    slots are zero so the wrapper can simply jnp.sum the partials).
    """
    i = pl.program_id(1)

    @pl.when(i == 0)
    def _():
        acc_ref[...] = jnp.zeros_like(acc_ref)

    x = pred_ref[...].astype(jnp.float32)
    z = targ_ref[...].astype(jnp.float32)
    # stable BCE-with-logits:  l(x, z) = max(x, 0) - x*z + log1p(exp(-|x|))
    acc_ref[...] += jnp.maximum(x, 0.0) - x * z + jnp.log1p(jnp.exp(-jnp.abs(x)))

    @pl.when(i == pl.num_programs(1) - 1)
    def _():
        s = jnp.sum(acc_ref[...])
        r = lax.broadcasted_iota(jnp.int32, (8, 128), 0)
        c = lax.broadcasted_iota(jnp.int32, (8, 128), 1)
        out_ref[...] = jnp.where((r == 0) & (c == 0), s, jnp.float32(0.0))


def logit_binary_cross_entropy(pred_score, target_score, weights=None, *,
                               lanes=512, tile_rows=1024, num_shards=2):
    """Equivalent of LogitBinaryCrossEntropy.forward:
        mean(BCEWithLogits(pred, target)) * target.shape[1]
    `weights` is accepted for signature parity but (as in the PyTorch module)
    is unused."""
    assert pred_score.shape == target_score.shape
    B, C = pred_score.shape
    N = B * C

    # Lane-dense layout: flatten to (rows_pad, lanes) with lanes a multiple of
    # 128 so every vreg / DMA / store is full-width.  Padded tail elements use
    # (logit=+100, target=1)  ->  loss = 100 - 100 + log1p(e^-100) ~= 0, so
    # they contribute nothing to the sum.
    rows = pl.cdiv(N, lanes)
    tr = min(tile_rows, pl.cdiv(rows, 8) * 8)        # rows per tile, mult. of 8
    tiles = pl.cdiv(rows, tr)
    shards = num_shards if tiles >= num_shards else 1    # v7x: 2 TCs in parallel
    tiles = pl.cdiv(tiles, shards) * shards
    inner = tiles // shards
    rows_pad = tiles * tr
    n_pad = rows_pad * lanes

    def _prep(a, pad_val):
        flat = a.reshape(-1)                  # free view; native dtype kept
        if n_pad != N:
            flat = jnp.pad(flat, (0, n_pad - N), constant_values=pad_val)
        return flat.reshape(rows_pad, lanes)

    x2 = _prep(pred_score, 100.0)             # no wrapper f32 cast: kernel upcasts
    z2 = _prep(target_score, 1.0)

    tile_bytes = tr * lanes * 4               # f32 accumulator tile
    in_tile_bytes = tr * lanes * (x2.dtype.itemsize + z2.dtype.itemsize)
    # 2 inputs x 2 pipeline buffers x tile + accumulator + headroom, capped so
    # it stays comfortably inside v7x's 64 MiB physical VMEM.
    vmem_limit = int(min(48 * 1024 * 1024,
                         max(32 * 1024 * 1024,
                             2 * in_tile_bytes + tile_bytes + (4 << 20))))

    in_bytes = (x2.size * x2.dtype.itemsize) + (z2.size * z2.dtype.itemsize)
    partials = pl.pallas_call(
        _bce_logits_partial_kernel,
        out_shape=jax.ShapeDtypeStruct((shards * 8, 128), jnp.float32),
        grid_spec=pltpu.PrefetchScalarGridSpec(
            num_scalar_prefetch=0,
            grid=(shards, inner),
            in_specs=[
                pl.BlockSpec((tr, lanes), lambda p, i: (p * inner + i, 0)),
                pl.BlockSpec((tr, lanes), lambda p, i: (p * inner + i, 0)),
            ],
            out_specs=pl.BlockSpec((8, 128), lambda p, i: (p, 0)),
            scratch_shapes=[pltpu.VMEM((tr, lanes), jnp.float32)],
        ),
        compiler_params=pltpu.CompilerParams(
            dimension_semantics=("parallel", "arbitrary"),
            vmem_limit_bytes=vmem_limit,
        ),
        cost_estimate=pl.CostEstimate(
            flops=5 * n_pad,
            transcendentals=2 * n_pad,
            bytes_accessed=in_bytes + shards * 8 * 128 * 4,
        ),
    )(x2, z2)

    loss_sum = jnp.sum(partials)              # only `shards` non-zero entries
    # size_average=True -> mean over all elements; then * target_score.size(1)
    return (loss_sum / jnp.float32(N)) * jnp.float32(C)


def _reference(pred_score, target_score):
    x = pred_score.astype(jnp.float32)
    z = target_score.astype(jnp.float32)
    l = jnp.maximum(x, 0.0) - x * z + jnp.log1p(jnp.exp(-jnp.abs(x)))
    return jnp.mean(l) * x.shape[1]


if __name__ == "__main__":
    key = jax.random.PRNGKey(0)
    k1, k2 = jax.random.split(key)
    B, C = 8, 32
    pred_score = jax.random.normal(k1, (B, C), dtype=jnp.float32) * 2.0
    # targets are soft labels in [0, 1] as in VQA-style BCE targets
    target_score = jax.random.uniform(k2, (B, C), dtype=jnp.float32)

    out = logit_binary_cross_entropy(pred_score, target_score)
    out = jax.block_until_ready(out)

    ref = _reference(pred_score, target_score)
    assert jnp.allclose(out, ref, rtol=1e-5, atol=1e-5), (out, ref)
    print("KERNEL_OK")
</pallas_src>

<mosaic_0001>
module attributes {stable_mosaic.version = 11 : i64} {
  func.func @_bce_logits_partial_kernel(%arg0: i32, %arg1: i32, %arg2: memref<8x512xf32, #tpu.memory_space<vmem>>, %arg3: memref<8x512xf32, #tpu.memory_space<vmem>>, %arg4: memref<8x128xf32, #tpu.memory_space<vmem>>, %arg5: memref<8x512xf32, #tpu.memory_space<vmem>>) attributes {dimension_semantics = [#tpu.dimension_semantics<parallel>, #tpu.dimension_semantics<arbitrary>], iteration_bounds = array<i64: 1, 1>, scalar_prefetch = 0 : i64, scratch_operands = 1 : i64, tpu.core_type = #tpu.core_type<tc>, window_params = [{transform_indices = @transform_0, window_bounds = array<i64: 8, 512>}, {transform_indices = @transform_1, window_bounds = array<i64: 8, 512>}, {transform_indices = @transform_2, window_bounds = array<i64: 8, 128>}]} {
    %c0_i32 = arith.constant 0 : i32
    %0 = arith.cmpi eq, %arg1, %c0_i32 : i32
    %1 = arith.extui %0 : i1 to i32
    %c0_i32_0 = arith.constant 0 : i32
    %2 = arith.cmpi ne, %1, %c0_i32_0 : i32
    scf.if %2 {
      %cst_11 = arith.constant 0.000000e+00 : f32
      %21 = vector.broadcast %cst_11 : f32 to vector<8x512xf32>
      %c0_12 = arith.constant 0 : index
      %c0_13 = arith.constant 0 : index
      %22 = vector.load %arg5[%c0_12, %c0_13] : memref<8x512xf32, #tpu.memory_space<vmem>>, vector<8x512xf32>
      tpu.vector_store %arg5[%c0_12, %c0_13], %21 {strides = array<i32>} : memref<8x512xf32, #tpu.memory_space<vmem>>, vector<8x512xf32>,
    } else {
    }
    %c0 = arith.constant 0 : index
    %c0_1 = arith.constant 0 : index
    %3 = vector.load %arg2[%c0, %c0_1] : memref<8x512xf32, #tpu.memory_space<vmem>>, vector<8x512xf32>
    %c0_2 = arith.constant 0 : index
    %c0_3 = arith.constant 0 : index
    %4 = vector.load %arg3[%c0_2, %c0_3] : memref<8x512xf32, #tpu.memory_space<vmem>>, vector<8x512xf32>
    %c0_4 = arith.constant 0 : index
    %c0_5 = arith.constant 0 : index
    %5 = vector.load %arg5[%c0_4, %c0_5] : memref<8x512xf32, #tpu.memory_space<vmem>>, vector<8x512xf32>
    %cst = arith.constant 0.000000e+00 : f32
    %6 = vector.broadcast %cst : f32 to vector<8x512xf32>
    %7 = arith.maximumf %3, %6 : vector<8x512xf32>
    %8 = arith.mulf %3, %4 : vector<8x512xf32>
    %9 = arith.subf %7, %8 : vector<8x512xf32>
    %10 = math.absf %3 : vector<8x512xf32>
    %cst_6 = arith.constant 0.000000e+00 : f32
    %11 = vector.broadcast %cst_6 : f32 to vector<8x512xf32>
    %12 = arith.subf %11, %10 : vector<8x512xf32>
    %13 = math.exp %12 : vector<8x512xf32>
    %14 = math.log1p %13 : vector<8x512xf32>
    %15 = arith.addf %9, %14 : vector<8x512xf32>
    %16 = arith.addf %5, %15 : vector<8x512xf32>
    %c0_7 = arith.constant 0 : index
    %c0_8 = arith.constant 0 : index
    %17 = vector.load %arg5[%c0_7, %c0_8] : memref<8x512xf32, #tpu.memory_space<vmem>>, vector<8x512xf32>
    tpu.vector_store %arg5[%c0_7, %c0_8], %16 {strides = array<i32>} : memref<8x512xf32, #tpu.memory_space<vmem>>, vector<8x512xf32>,
    %c0_i32_9 = arith.constant 0 : i32
    %18 = arith.cmpi eq, %arg1, %c0_i32_9 : i32
    %19 = arith.extui %18 : i1 to i32
    %c0_i32_10 = arith.constant 0 : i32
    %20 = arith.cmpi ne, %19, %c0_i32_10 : i32
    scf.if %20 {
      %c0_11 = arith.constant 0 : index
      %c0_12 = arith.constant 0 : index
      %21 = vector.load %arg5[%c0_11, %c0_12] : memref<8x512xf32, #tpu.memory_space<vmem>>, vector<8x512xf32>
      %22 = vector.shape_cast %21 : vector<8x512xf32> to vector<1x8x512xf32>
      %cst_13 = arith.constant dense<0.000000e+00> : vector<1xf32>
      %23 = vector.multi_reduction <add>, %22, %cst_13 [1, 2] : vector<1x8x512xf32> to vector<1xf32>
      %24 = vector.shape_cast %23 : vector<1xf32> to vector<1x1x1xf32>
      %25 = vector.extract %24[0, 0, 0] : f32 from vector<1x1x1xf32>
      %26 = tpu.iota {dimensions = array<i32: 0>} : vector<8x128xi32>
      %27 = tpu.iota {dimensions = array<i32: 1>} : vector<8x128xi32>
      %c0_i32_14 = arith.constant 0 : i32
      %28 = vector.broadcast %c0_i32_14 : i32 to vector<8x128xi32>
      %29 = arith.cmpi eq, %26, %28 : vector<8x128xi32>
      %c0_i32_15 = arith.constant 0 : i32
      %30 = vector.broadcast %c0_i32_15 : i32 to vector<8x128xi32>
      %31 = arith.cmpi eq, %27, %30 : vector<8x128xi32>
      %32 = arith.andi %29, %31 : vector<8x128xi1>
      %cst_16 = arith.constant 0.000000e+00 : f32
      %33 = vector.broadcast %25 : f32 to vector<8x128xf32>
      %34 = vector.broadcast %cst_16 : f32 to vector<8x128xf32>
      %35 = arith.select %32, %33, %34 : vector<8x128xi1>, vector<8x128xf32>
      %c0_17 = arith.constant 0 : index
      %c0_18 = arith.constant 0 : index
      %36 = vector.load %arg4[%c0_17, %c0_18] : memref<8x128xf32, #tpu.memory_space<vmem>>, vector<8x128xf32>
      tpu.vector_store %arg4[%c0_17, %c0_18], %35 {strides = array<i32>} : memref<8x128xf32, #tpu.memory_space<vmem>>, vector<8x128xf32>,
    } else {
    }
    return
  }
  func.func @transform_0(%arg0: i32, %arg1: i32) -> (i32, i32) {
    %c1_i32 = arith.constant 1 : i32
    %0 = arith.muli %arg0, %c1_i32 : i32
    %1 = arith.addi %0, %arg1 : i32
    %c0_i32 = arith.constant 0 : i32
    %c0_i32_0 = arith.constant 0 : i32
    return %1, %c0_i32 : i32, i32
  }
  func.func @transform_1(%arg0: i32, %arg1: i32) -> (i32, i32) {
    %c1_i32 = arith.constant 1 : i32
    %0 = arith.muli %arg0, %c1_i32 : i32
    %1 = arith.addi %0, %arg1 : i32
    %c0_i32 = arith.constant 0 : i32
    %c0_i32_0 = arith.constant 0 : i32
    return %1, %c0_i32 : i32, i32
  }
  func.func @transform_2(%arg0: i32, %arg1: i32) -> (i32, i32) {
    %c0_i32 = arith.constant 0 : i32
    %c0_i32_0 = arith.constant 0 : i32
    return %arg0, %c0_i32 : i32, i32
  }
}

</mosaic_0001>

<bundles_post_ra>
// kernel: tpu_custom_call.1
= control target key start
LH: loop header
LB: loop body
LE: loop exit
PB: predicated region body
PF: predicated region fallthrough
CT: control target
= control target key end

     0   :  { %7 = vsyncpa [#allocation4], 0  ;;  %s356_s0 = inlined_call_operand.hbm [shape: f32[8,512], index: 0, kind: input, shape index: {}]   ;;  %s357_s1 = inlined_call_operand.hbm [shape: f32[8,512], index: 1, kind: input, shape index: {}]   ;;  %s358_s2 = inlined_call_operand.hbm [shape: f32[8,128], index: 2, kind: output, shape index: {}]  }
   0x1   :  { %8 = vsyncpa [#allocation7], 0 }
   0x2   :  { %9 = vsyncpa [#allocation5], 0  ;;  %s280_s9 = smov [#allocation3]   ;;  %s281_s11 = smov [#allocation6]  }
   0x3   :  { %s20_s10 = sshll.u32 %s280_s9, 4  ;;  %s34_s12 = sshll.u32 %s281_s11, 4  ;;  %s21_s10 = int_to_ptr.vmem [resolvable:$true] %s20_s10  ;;  %s35_s12 = int_to_ptr.vmem [resolvable:$true] %s34_s12 }
   0x4   :  { %s208_s15 = scalar_lea.hbm %s356_s0, 512 }
   0x5   :  { %p209_p0 = scmp.ne.s32.totalorder %s356_s0, %s208_s15  ;;  %p212_p1 = scmp.lt.u32.totalorder %s208_s15, %s356_s0 }
   0x7   :  { %p214_p2 = pnand %p212_p1, %p209_p0 }
   0x9   :  { %217 = shalt.err (!%p214_p2)
}
   0xa   :  { %s218_s20 = scalar_lea.vmem %s21_s10, 512  ;;  %p223_p4 = scmp.lt.s32.totalorder %s21_s10, %s21_s10 }
   0xb   :  { %p219_p3 = scmp.ne.s32.totalorder %s21_s10, %s218_s20  ;;  %p224_p5 = scmp.lt.s32.totalorder %s218_s20, %s218_s20 }
   0xd   :  { %p225_p6 = por %p224_p5, %p223_p4 }
   0xf   :  { %p226_p7 = pnand %p225_p6, %p219_p3 }
  0x11   :  { %229 = shalt.err (!%p226_p7)
}
  0x12   :  { %23 = dma.hbm_to_vmem [thread:$0]  %s356_s0, 512, %s21_s10, [#allocation4]  }
  0x13   :  { %s230_s25 = scalar_lea.hbm %s357_s1, 512 }
  0x14   :  { %p231_p8 = scmp.ne.s32.totalorder %s357_s1, %s230_s25  ;;  %p234_p9 = scmp.lt.u32.totalorder %s230_s25, %s357_s1 }
  0x16   :  { %p236_p10 = pnand %p234_p9, %p231_p8 }
  0x18   :  { %239 = shalt.err (!%p236_p10)
}
  0x19   :  { %s240_s30 = scalar_lea.vmem %s35_s12, 512  ;;  %p245_p12 = scmp.lt.s32.totalorder %s35_s12, %s35_s12 }
  0x1a   :  { %p241_p11 = scmp.ne.s32.totalorder %s35_s12, %s240_s30  ;;  %p246_p13 = scmp.lt.s32.totalorder %s240_s30, %s240_s30 }
  0x1c   :  { %p247_p0 = por %p246_p13, %p245_p12 }
  0x1e   :  { %p248_p1 = pnand %p247_p0, %p241_p11 }
  0x20   :  { %251 = shalt.err (!%p248_p1)
}
  0x21   :  { %37 = dma.hbm_to_vmem [thread:$0]  %s357_s1, 512, %s35_s12, [#allocation7]  }
  0x22   :  { %274 = dma.done.wait [#allocation4], 512  }
  0x23   :  { %275 = vsyncadd [#allocation4], 4294966784 }
  0x24   :  { %276 = dma.done.wait [#allocation7], 512  }
  0x25   :  { %277 = vsyncadd [#allocation7], 4294966784  ;;  %v54_v0 = vld [vmem:[#allocation3] sm:$0xff]  ;;  %v55_v1 = vld [vmem:[#allocation3 + $0x8] sm:$0xff]  ;;  %s282_s1 = smov [#allocation8]  }
  0x26   :  { %v322_v2 = vld [vmem:[#allocation3 + $0x10] sm:$0xff]  ;;  %v324_v3 = vld [vmem:[#allocation3 + $0x18] sm:$0xff]  ;;  %v78_v4 = vand.u32 2147483647, %v54_v0  ;;  %v79_v5 = vand.u32 2147483647, %v55_v1 }
  0x27   :  { %v80_v6 = vand.u32 2147483647, %v322_v2  ;;  %v81_v7 = vand.u32 2147483647, %v324_v3  ;;  %v58_v26 = vld [vmem:[#allocation6] sm:$0xff]  ;;  %v59_v28 = vld [vmem:[#allocation6 + $0x8] sm:$0xff] }
  0x28   :  { %v82_v8 = vsub.f32 0.0, %v78_v4  ;;  %v83_v9 = vsub.f32 0.0, %v79_v5  ;;  %v60_v29 = vld [vmem:[#allocation6 + $0x10] sm:$0xff]  ;;  %v61_v32 = vld [vmem:[#allocation6 + $0x18] sm:$0xff]  ;;  %v66_v33 = vmax.f32 %v54_v0, 0.0  ;;  %v70_v34 = vmul.f32 %v58_v26, %v54_v0  ;;  %s177_s4 = sshll.u32 %s282_s1, 4  ;;  %s178_s4 = int_to_ptr.vmem [resolvable:$true] %s177_s4 }
  0x29   :  { %v84_v10 = vsub.f32 0.0, %v80_v6  ;;  %v85_v11 = vsub.f32 0.0, %v81_v7  ;;  %v67_v37 = vmax.f32 %v55_v1, 0.0  ;;  %v71_v38 = vmul.f32 %v59_v28, %v55_v1  ;;  %s252_s6 = scalar_lea.vmem %s178_s4, 128  ;;  %p257_p3 = scmp.lt.s32.totalorder %s178_s4, %s178_s4 }
  0x2a   :  { %v86_v12 = vmul.f32 1.442695, %v82_v8  ;;  %v88_v13 = vmul.f32 1.442695, %v83_v9  ;;  %v68_v41 = vmax.f32 %v322_v2, 0.0  ;;  %v72_v42 = vmul.f32 %v60_v29, %v322_v2  ;;  %p253_p2 = scmp.ne.s32.totalorder %s178_s4, %s252_s6  ;;  %p258_p4 = scmp.lt.s32.totalorder %s252_s6, %s252_s6 }
  0x2b   :  { %v90_v14 = vmul.f32 1.442695, %v84_v10  ;;  %v92_v15 = vmul.f32 1.442695, %v85_v11  ;;  %v69_v44 = vmax.f32 %v324_v3, 0.0  ;;  %v73_v45 = vmul.f32 %v61_v32, %v324_v3 }
  0x2c   :  { %192 = vpow2.f32 %v86_v12  ;;  %v74_v49 = vsub.f32 %v66_v33, %v70_v34  ;;  %v75_v54 = vsub.f32 %v67_v37, %v71_v38  ;;  %v76_v59 = vsub.f32 %v68_v41, %v72_v42  ;;  %p259_p5 = por %p258_p4, %p257_p3 }
  0x2d   :  { %194 = vpow2.f32 %v88_v13  ;;  %v77_v1 = vsub.f32 %v69_v44, %v73_v45 }
  0x2e   :  { %196 = vpow2.f32 %v90_v14  ;;  %p260_p6 = pnand %p259_p5, %p253_p2 }
  0x2f   :  { %198 = vpow2.f32 %v92_v15 }
  0x36   :  { %v193_v16 = vpop.eup %192 }
  0x37   :  { %v195_v17 = vpop.eup %194  ;;  %v94_v18 = vadd.f32 1.0, %v193_v16  ;;  %v97_v23 = vmul.f32 -0.5, %v193_v16  ;;  %v100_v35 = vand.u32 2147483647, %v193_v16 }
  0x38   :  { %v197_v19 = vpop.eup %196  ;;  %v103_v20 = vadd.f32 1.0, %v195_v17  ;;  %v106_v24 = vmul.f32 -0.5, %v195_v17  ;;  %v109_v39 = vand.u32 2147483647, %v195_v17 }
  0x39   :  { %v199_v21 = vpop.eup %198  ;;  %200 = vlog2.f32 %v94_v18  ;;  %v112_v22 = vadd.f32 1.0, %v197_v19  ;;  %v115_v27 = vmul.f32 -0.5, %v197_v19  ;;  %v98_v30 = vadd.f32 1.0, %v97_v23 }
  0x3a   :  { %202 = vlog2.f32 %v103_v20  ;;  %v121_v25 = vadd.f32 1.0, %v199_v21  ;;  %v124_v31 = vmul.f32 -0.5, %v199_v21  ;;  %v107_v36 = vadd.f32 1.0, %v106_v24 }
  0x3b   :  { %204 = vlog2.f32 %v112_v22  ;;  %v116_v40 = vadd.f32 1.0, %v115_v27  ;;  %v118_v43 = vand.u32 2147483647, %v197_v19  ;;  %v99_v46 = vmul.f32 %v193_v16, %v98_v30 }
  0x3c   :  { %206 = vlog2.f32 %v121_v25  ;;  %v125_v47 = vadd.f32 1.0, %v124_v31  ;;  %vm332_vm0 = vcmp.lt.f32.partialorder %v100_v35, 0.0004427343  ;;  %v108_v51 = vmul.f32 %v195_v17, %v107_v36 }
  0x3d   :  { %v127_v52 = vand.u32 2147483647, %v199_v21  ;;  %vm336_vm1 = vcmp.lt.f32.partialorder %v109_v39, 0.0004427343  ;;  %v117_v57 = vmul.f32 %v197_v19, %v116_v40  ;;  %vm119_vm2 = vcmp.lt.f32.partialorder %v118_v43, 0.0004427343 }
  0x3e   :  { %v126_v63 = vmul.f32 %v199_v21, %v125_v47  ;;  %v161_v20 = vlaneseq }
  0x3f   :  { %vm128_vm3 = vcmp.lt.f32.partialorder %v127_v52, 0.0004427343 }
  0x40   :  { %v162_v21 = vshrl.u32 %v161_v20, 7  ;;  %v164_v22 = vand.u32 127, %v161_v20 }
  0x42   :  { %vm165_vm4 = vcmp.eq.s32.totalorder %v162_v21, 0  ;;  %vm166_vm5 = vcmp.eq.s32.totalorder %v164_v22, 0 }
  0x43   :  { %v201_v48 = vpop.eup %200  ;;  %vm167_vm6 = vmand %vm165_vm4, %vm166_vm5 }
  0x44   :  { %v203_v53 = vpop.eup %202  ;;  %v96_v55 = vmul.f32 0.6931472, %v201_v48 }
  0x45   :  { %v205_v58 = vpop.eup %204  ;;  %v105_v60 = vmul.f32 0.6931472, %v203_v53 }
  0x46   :  { %v102_v61 = vsel %vm332_vm0, %v99_v46, %v96_v55  ;;  %v114_v62 = vmul.f32 0.6931472, %v205_v58  ;;  %v207_v0 = vpop.eup %206 }
  0x47   :  { %v111_v2 = vsel %vm336_vm1, %v108_v51, %v105_v60  ;;  %v130_v3 = vadd.f32 %v102_v61, %v74_v49  ;;  %v123_v5 = vmul.f32 0.6931472, %v207_v0 }
  0x48   :  { %v120_v4 = vsel %vm119_vm2, %v117_v57, %v114_v62  ;;  %v131_v6 = vadd.f32 %v111_v2, %v75_v54 }
  0x49   :  { %v132_v7 = vadd.f32 %v120_v4, %v76_v59  ;;  %v129_v8 = vsel %vm128_vm3, %v126_v63, %v123_v5 }
  0x4a   :  { %v149_v9 = vadd.f32 %v131_v6, %v130_v3  ;;  %v133_v10 = vadd.f32 %v129_v8, %v77_v1 }
  0x4c   :  { %v150_v11 = vadd.f32 %v149_v9, %v132_v7 }
  0x4e   :  { %v151_v12 = vadd.f32 %v150_v11, %v133_v10 }
  0x50   :  { %152 = vadd.xlane.f32.xlu0 %v151_v12 }
  0xdd   :  { %v153_v13 = vpop.xlane.xlu0 %152 }
  0xde   :  { %v154_v14 = vrot.slane %v153_v13, 4 }
  0xe0   :  { %v155_v15 = vadd.f32 %v154_v14, %v153_v13 }
  0xe2   :  { %v156_v16 = vrot.slane %v155_v15, 2 }
  0xe4   :  { %v157_v17 = vadd.f32 %v156_v16, %v155_v15 }
  0xe6   :  { %v158_v18 = vrot.slane %v157_v17, 1 }
  0xe8   :  { %v159_v19 = vadd.f32 %v158_v18, %v157_v17 }
  0xea   :  { %187 = vpush %v159_v19 }
 0x11b   :  { %s188_s5 = spop %187 }
 0x11c   :  { %v168_v23 = vstv %s188_s5 }
 0x11d   :  { %v169_v24 = vsel %vm167_vm6, %v168_v23, 0.0 }
 0x11e   :  { %170 = vst [vmem:[#allocation8] sm:$0xff] %v169_v24 }
 0x11f   :  { %263 = shalt.err (!%p260_p6)
}
 0x120   :  { %s264_s9 = scalar_lea.hbm %s358_s2, 128 }
 0x121   :  { %p265_p7 = scmp.ne.s32.totalorder %s358_s2, %s264_s9  ;;  %p268_p8 = scmp.lt.u32.totalorder %s264_s9, %s358_s2 }
 0x123   :  { %p270_p9 = pnand %p268_p8, %p265_p7 }
 0x125   :  { %273 = shalt.err (!%p270_p9)
}
 0x126   :  { %180 = dma.vmem_to_hbm [thread:$0]  %s178_s4, 128, %s358_s2, [#allocation5]  }
 0x127   :  { %278 = dma.done.wait [#allocation5], 128  }
 0x128   :  { %279 = vsyncadd [#allocation5], 4294967168 }
 0x129   :  { %184 = vsyncpa [#allocation4], 1 }
 0x12a   :  { %185 = vsyncpa [#allocation7], 1 }
 0x12b   :  { %186 = vsyncpa [#allocation5], 1 }

</bundles_post_ra>
